<compile_context>
chip_gen: v5e
topology: v5e:2x2
jax: 0.10.0
libtpu: 0.0.40
codegen_flags: <defaults>
</compile_context>

<pallas_src>
import jax
import jax.numpy as jnp
from jax.experimental import pallas as pl
from jax.experimental.pallas import tpu as pltpu


# ---------------------------------------------------------------------------
# Parameter packing layout (flat f32 vector, PyTorch (out, in) weight layout):
#   [ 0: 8)  w1  (4,2) row-major
#   [ 8:12)  b1  (4,)
#   [12:28)  w2  (4,4) row-major
#   [28:32)  b2  (4,)
#   [32:36)  w3  (1,4)
#   [36:37)  b3  (1,)
# padded to 64 entries (1-D SMEM pads to a power of two anyway).
# ---------------------------------------------------------------------------
_P_W1, _P_B1, _P_W2, _P_B2, _P_W3, _P_B3 = 0, 8, 12, 28, 32, 36
_PACKED_LEN = 64

# Batch elements per grid block must be a multiple of 8*128 = 1024 so the
# (rows, 128) block has a sublane count divisible by 8.
_BLOCK_QUANTUM = 8 * 128


def _round_up(n, m):
    return ((n + m - 1) // m) * m


def _pack_params(params):
    flat = jnp.concatenate([
        params["w1"].reshape(-1), params["b1"].reshape(-1),
        params["w2"].reshape(-1), params["b2"].reshape(-1),
        params["w3"].reshape(-1), params["b3"].reshape(-1),
    ]).astype(jnp.float32)
    return jnp.pad(flat, (0, _PACKED_LEN - flat.shape[0]))


def _mlp_kernel(p_ref, x_ref, o_ref):
    """p_ref: SMEM (64,) f32 packed params.
       x_ref: VMEM (2, R, 128) f32 -- feature-planar, batch dense in
              sublanes (R) x lanes (128).
       o_ref: VMEM (R, 128) f32."""
    x0 = x_ref[0]                                         # (R, 128)
    x1 = x_ref[1]                                         # (R, 128)

    # Layer 1: Linear(2, 4) + ReLU  (unrolled VPU FMAs, scalars from SMEM)
    h1 = []
    for j in range(4):
        acc = p_ref[_P_W1 + 2 * j + 0] * x0 \
            + p_ref[_P_W1 + 2 * j + 1] * x1 \
            + p_ref[_P_B1 + j]
        h1.append(jnp.maximum(acc, 0.0))

    # Layer 2: Linear(4, 4) + ReLU
    h2 = []
    for j in range(4):
        acc = p_ref[_P_W2 + 4 * j + 0] * h1[0]
        for k in range(1, 4):
            acc = acc + p_ref[_P_W2 + 4 * j + k] * h1[k]
        acc = acc + p_ref[_P_B2 + j]
        h2.append(jnp.maximum(acc, 0.0))

    # Layer 3: Linear(4, 1) + Sigmoid
    h3 = p_ref[_P_W3 + 0] * h2[0]
    for k in range(1, 4):
        h3 = h3 + p_ref[_P_W3 + k] * h2[k]
    h3 = h3 + p_ref[_P_B3]

    # sigmoid(x) == 0.5 + 0.5*tanh(0.5*x); tanh goes to the EUP slot.
    o_ref[...] = (0.5 + 0.5 * jnp.tanh(0.5 * h3)).astype(o_ref.dtype)


def mlp_forward(x, params, *, block_b=131072):
    """x: (B, 2) float32. Returns (B, 1) float32 (same as PyTorch forward)."""
    B = x.shape[0]

    # Block size: multiple of 1024 (8 sublanes * 128 lanes), large by default
    # so per-step pipeline overhead vanishes, but never bigger than needed.
    block_b = max(_BLOCK_QUANTUM, _round_up(block_b, _BLOCK_QUANTUM))
    tb = min(block_b, _round_up(B, _BLOCK_QUANTUM))       # elems per block
    b_pad = _round_up(B, tb)
    rows = b_pad // 128                                   # total sublane rows
    r_blk = tb // 128                                     # rows per block (mult of 8)

    # Feature-planar, batch-dense layout: (2, rows, 128).  One small
    # (B,2)->(2,B) transpose + zero-pad; the trailing reshape is contiguous.
    xt = jnp.pad(x.T.astype(jnp.float32),
                 ((0, 0), (0, b_pad - B))).reshape(2, rows, 128)
    packed = _pack_params(params)

    out = pl.pallas_call(
        _mlp_kernel,
        out_shape=jax.ShapeDtypeStruct((rows, 128), jnp.float32),
        grid=(rows // r_blk,),
        in_specs=[
            pl.BlockSpec(memory_space=pltpu.MemorySpace.SMEM),      # params
            pl.BlockSpec((2, r_blk, 128), lambda i: (0, i, 0)),     # x planar
        ],
        out_specs=pl.BlockSpec((r_blk, 128), lambda i: (i, 0)),     # out
        compiler_params=pltpu.CompilerParams(
            dimension_semantics=("parallel",)),
    )(packed, xt)

    # (rows,128) -> (b_pad,1) is a contiguous (free) reshape; no transpose.
    return out.reshape(b_pad, 1)[:B]


def init_params(key):
    """Deterministic init mimicking PyTorch Linear's U(-1/sqrt(fan_in), +).
    Weights kept in PyTorch layout: w (out, in), b (out,)."""
    ks = jax.random.split(key, 6)

    def lin(kw, kb, fan_in, fan_out):
        bound = 1.0 / jnp.sqrt(float(fan_in))
        w = jax.random.uniform(kw, (fan_out, fan_in), jnp.float32, -bound, bound)
        b = jax.random.uniform(kb, (fan_out,), jnp.float32, -bound, bound)
        return w, b

    w1, b1 = lin(ks[0], ks[1], 2, 4)
    w2, b2 = lin(ks[2], ks[3], 4, 4)
    w3, b3 = lin(ks[4], ks[5], 4, 1)
    return {"w1": w1, "b1": b1, "w2": w2, "b2": b2, "w3": w3, "b3": b3}


def predict(x, params):
    """Equivalent of MyModule.predict: threshold sigmoid output at 0.5."""
    pred = mlp_forward(x, params)[:, 0]
    return (pred >= 0.5).astype(jnp.float32)


def _reference(x, p):
    h1 = jnp.maximum(x @ p["w1"].T + p["b1"], 0.0)
    h2 = jnp.maximum(h1 @ p["w2"].T + p["b2"], 0.0)
    return jax.nn.sigmoid(h2 @ p["w3"].T + p["b3"])


if __name__ == "__main__":
    key = jax.random.PRNGKey(0)
    k_x, k_p = jax.random.split(key)

    B = 8
    x = jax.random.normal(k_x, (B, 2), dtype=jnp.float32)
    params = init_params(k_p)

    out = mlp_forward(x, params)
    out = jax.block_until_ready(out)

    ref = _reference(x, params)
    assert out.shape == (B, 1)
    assert jnp.allclose(out, ref, atol=1e-5, rtol=1e-5), "mismatch vs reference"

    # also exercise a larger, non-multiple batch and predict()
    x_big = jax.random.normal(k_x, (1000, 2), dtype=jnp.float32)
    out_big = jax.block_until_ready(mlp_forward(x_big, params))
    assert out_big.shape == (1000, 1)
    assert jnp.allclose(out_big, _reference(x_big, params), atol=1e-5, rtol=1e-5)
    jax.block_until_ready(predict(x, params))

    print("KERNEL_OK")
</pallas_src>

<mosaic_0001>
module attributes {stable_mosaic.version = 11 : i64} {
  func.func @_mlp_kernel(%arg0: i32, %arg1: memref<64xf32, #tpu.memory_space<smem>>, %arg2: memref<2x8x128xf32, #tpu.memory_space<vmem>>, %arg3: memref<8x128xf32, #tpu.memory_space<vmem>>) attributes {dimension_semantics = [#tpu.dimension_semantics<parallel>], iteration_bounds = array<i64: 1>, scalar_prefetch = 0 : i64, scratch_operands = 0 : i64, tpu.core_type = #tpu.core_type<tc>, window_params = [{transform_indices = @transform_0, window_bounds = array<i64: 64>}, {transform_indices = @transform_1, window_bounds = array<i64: 2, 8, 128>}, {transform_indices = @transform_2, window_bounds = array<i64: 8, 128>}]} {
    %c0 = arith.constant 0 : index
    %c0_0 = arith.constant 0 : index
    %c0_1 = arith.constant 0 : index
    %0 = vector.load %arg2[%c0, %c0_0, %c0_1] : memref<2x8x128xf32, #tpu.memory_space<vmem>>, vector<1x8x128xf32>
    %1 = vector.shape_cast %0 : vector<1x8x128xf32> to vector<8x128xf32>
    %c1 = arith.constant 1 : index
    %c0_2 = arith.constant 0 : index
    %c0_3 = arith.constant 0 : index
    %2 = vector.load %arg2[%c1, %c0_2, %c0_3] : memref<2x8x128xf32, #tpu.memory_space<vmem>>, vector<1x8x128xf32>
    %3 = vector.shape_cast %2 : vector<1x8x128xf32> to vector<8x128xf32>
    %c0_4 = arith.constant 0 : index
    %4 = memref.load %arg1[%c0_4] : memref<64xf32, #tpu.memory_space<smem>>
    %5 = vector.broadcast %4 : f32 to vector<8x128xf32>
    %6 = arith.mulf %5, %1 : vector<8x128xf32>
    %c1_5 = arith.constant 1 : index
    %7 = memref.load %arg1[%c1_5] : memref<64xf32, #tpu.memory_space<smem>>
    %8 = vector.broadcast %7 : f32 to vector<8x128xf32>
    %9 = arith.mulf %8, %3 : vector<8x128xf32>
    %10 = arith.addf %6, %9 : vector<8x128xf32>
    %c8 = arith.constant 8 : index
    %11 = memref.load %arg1[%c8] : memref<64xf32, #tpu.memory_space<smem>>
    %12 = vector.broadcast %11 : f32 to vector<8x128xf32>
    %13 = arith.addf %10, %12 : vector<8x128xf32>
    %cst = arith.constant 0.000000e+00 : f32
    %14 = vector.broadcast %cst : f32 to vector<8x128xf32>
    %15 = arith.maximumf %13, %14 : vector<8x128xf32>
    %c2 = arith.constant 2 : index
    %16 = memref.load %arg1[%c2] : memref<64xf32, #tpu.memory_space<smem>>
    %17 = vector.broadcast %16 : f32 to vector<8x128xf32>
    %18 = arith.mulf %17, %1 : vector<8x128xf32>
    %c3 = arith.constant 3 : index
    %19 = memref.load %arg1[%c3] : memref<64xf32, #tpu.memory_space<smem>>
    %20 = vector.broadcast %19 : f32 to vector<8x128xf32>
    %21 = arith.mulf %20, %3 : vector<8x128xf32>
    %22 = arith.addf %18, %21 : vector<8x128xf32>
    %c9 = arith.constant 9 : index
    %23 = memref.load %arg1[%c9] : memref<64xf32, #tpu.memory_space<smem>>
    %24 = vector.broadcast %23 : f32 to vector<8x128xf32>
    %25 = arith.addf %22, %24 : vector<8x128xf32>
    %cst_6 = arith.constant 0.000000e+00 : f32
    %26 = vector.broadcast %cst_6 : f32 to vector<8x128xf32>
    %27 = arith.maximumf %25, %26 : vector<8x128xf32>
    %c4 = arith.constant 4 : index
    %28 = memref.load %arg1[%c4] : memref<64xf32, #tpu.memory_space<smem>>
    %29 = vector.broadcast %28 : f32 to vector<8x128xf32>
    %30 = arith.mulf %29, %1 : vector<8x128xf32>
    %c5 = arith.constant 5 : index
    %31 = memref.load %arg1[%c5] : memref<64xf32, #tpu.memory_space<smem>>
    %32 = vector.broadcast %31 : f32 to vector<8x128xf32>
    %33 = arith.mulf %32, %3 : vector<8x128xf32>
    %34 = arith.addf %30, %33 : vector<8x128xf32>
    %c10 = arith.constant 10 : index
    %35 = memref.load %arg1[%c10] : memref<64xf32, #tpu.memory_space<smem>>
    %36 = vector.broadcast %35 : f32 to vector<8x128xf32>
    %37 = arith.addf %34, %36 : vector<8x128xf32>
    %cst_7 = arith.constant 0.000000e+00 : f32
    %38 = vector.broadcast %cst_7 : f32 to vector<8x128xf32>
    %39 = arith.maximumf %37, %38 : vector<8x128xf32>
    %c6 = arith.constant 6 : index
    %40 = memref.load %arg1[%c6] : memref<64xf32, #tpu.memory_space<smem>>
    %41 = vector.broadcast %40 : f32 to vector<8x128xf32>
    %42 = arith.mulf %41, %1 : vector<8x128xf32>
    %c7 = arith.constant 7 : index
    %43 = memref.load %arg1[%c7] : memref<64xf32, #tpu.memory_space<smem>>
    %44 = vector.broadcast %43 : f32 to vector<8x128xf32>
    %45 = arith.mulf %44, %3 : vector<8x128xf32>
    %46 = arith.addf %42, %45 : vector<8x128xf32>
    %c11 = arith.constant 11 : index
    %47 = memref.load %arg1[%c11] : memref<64xf32, #tpu.memory_space<smem>>
    %48 = vector.broadcast %47 : f32 to vector<8x128xf32>
    %49 = arith.addf %46, %48 : vector<8x128xf32>
    %cst_8 = arith.constant 0.000000e+00 : f32
    %50 = vector.broadcast %cst_8 : f32 to vector<8x128xf32>
    %51 = arith.maximumf %49, %50 : vector<8x128xf32>
    %c12 = arith.constant 12 : index
    %52 = memref.load %arg1[%c12] : memref<64xf32, #tpu.memory_space<smem>>
    %53 = vector.broadcast %52 : f32 to vector<8x128xf32>
    %54 = arith.mulf %53, %15 : vector<8x128xf32>
    %c13 = arith.constant 13 : index
    %55 = memref.load %arg1[%c13] : memref<64xf32, #tpu.memory_space<smem>>
    %56 = vector.broadcast %55 : f32 to vector<8x128xf32>
    %57 = arith.mulf %56, %27 : vector<8x128xf32>
    %58 = arith.addf %54, %57 : vector<8x128xf32>
    %c14 = arith.constant 14 : index
    %59 = memref.load %arg1[%c14] : memref<64xf32, #tpu.memory_space<smem>>
    %60 = vector.broadcast %59 : f32 to vector<8x128xf32>
    %61 = arith.mulf %60, %39 : vector<8x128xf32>
    %62 = arith.addf %58, %61 : vector<8x128xf32>
    %c15 = arith.constant 15 : index
    %63 = memref.load %arg1[%c15] : memref<64xf32, #tpu.memory_space<smem>>
    %64 = vector.broadcast %63 : f32 to vector<8x128xf32>
    %65 = arith.mulf %64, %51 : vector<8x128xf32>
    %66 = arith.addf %62, %65 : vector<8x128xf32>
    %c28 = arith.constant 28 : index
    %67 = memref.load %arg1[%c28] : memref<64xf32, #tpu.memory_space<smem>>
    %68 = vector.broadcast %67 : f32 to vector<8x128xf32>
    %69 = arith.addf %66, %68 : vector<8x128xf32>
    %cst_9 = arith.constant 0.000000e+00 : f32
    %70 = vector.broadcast %cst_9 : f32 to vector<8x128xf32>
    %71 = arith.maximumf %69, %70 : vector<8x128xf32>
    %c16 = arith.constant 16 : index
    %72 = memref.load %arg1[%c16] : memref<64xf32, #tpu.memory_space<smem>>
    %73 = vector.broadcast %72 : f32 to vector<8x128xf32>
    %74 = arith.mulf %73, %15 : vector<8x128xf32>
    %c17 = arith.constant 17 : index
    %75 = memref.load %arg1[%c17] : memref<64xf32, #tpu.memory_space<smem>>
    %76 = vector.broadcast %75 : f32 to vector<8x128xf32>
    %77 = arith.mulf %76, %27 : vector<8x128xf32>
    %78 = arith.addf %74, %77 : vector<8x128xf32>
    %c18 = arith.constant 18 : index
    %79 = memref.load %arg1[%c18] : memref<64xf32, #tpu.memory_space<smem>>
    %80 = vector.broadcast %79 : f32 to vector<8x128xf32>
    %81 = arith.mulf %80, %39 : vector<8x128xf32>
    %82 = arith.addf %78, %81 : vector<8x128xf32>
    %c19 = arith.constant 19 : index
    %83 = memref.load %arg1[%c19] : memref<64xf32, #tpu.memory_space<smem>>
    %84 = vector.broadcast %83 : f32 to vector<8x128xf32>
    %85 = arith.mulf %84, %51 : vector<8x128xf32>
    %86 = arith.addf %82, %85 : vector<8x128xf32>
    %c29 = arith.constant 29 : index
    %87 = memref.load %arg1[%c29] : memref<64xf32, #tpu.memory_space<smem>>
    %88 = vector.broadcast %87 : f32 to vector<8x128xf32>
    %89 = arith.addf %86, %88 : vector<8x128xf32>
    %cst_10 = arith.constant 0.000000e+00 : f32
    %90 = vector.broadcast %cst_10 : f32 to vector<8x128xf32>
    %91 = arith.maximumf %89, %90 : vector<8x128xf32>
    %c20 = arith.constant 20 : index
    %92 = memref.load %arg1[%c20] : memref<64xf32, #tpu.memory_space<smem>>
    %93 = vector.broadcast %92 : f32 to vector<8x128xf32>
    %94 = arith.mulf %93, %15 : vector<8x128xf32>
    %c21 = arith.constant 21 : index
    %95 = memref.load %arg1[%c21] : memref<64xf32, #tpu.memory_space<smem>>
    %96 = vector.broadcast %95 : f32 to vector<8x128xf32>
    %97 = arith.mulf %96, %27 : vector<8x128xf32>
    %98 = arith.addf %94, %97 : vector<8x128xf32>
    %c22 = arith.constant 22 : index
    %99 = memref.load %arg1[%c22] : memref<64xf32, #tpu.memory_space<smem>>
    %100 = vector.broadcast %99 : f32 to vector<8x128xf32>
    %101 = arith.mulf %100, %39 : vector<8x128xf32>
    %102 = arith.addf %98, %101 : vector<8x128xf32>
    %c23 = arith.constant 23 : index
    %103 = memref.load %arg1[%c23] : memref<64xf32, #tpu.memory_space<smem>>
    %104 = vector.broadcast %103 : f32 to vector<8x128xf32>
    %105 = arith.mulf %104, %51 : vector<8x128xf32>
    %106 = arith.addf %102, %105 : vector<8x128xf32>
    %c30 = arith.constant 30 : index
    %107 = memref.load %arg1[%c30] : memref<64xf32, #tpu.memory_space<smem>>
    %108 = vector.broadcast %107 : f32 to vector<8x128xf32>
    %109 = arith.addf %106, %108 : vector<8x128xf32>
    %cst_11 = arith.constant 0.000000e+00 : f32
    %110 = vector.broadcast %cst_11 : f32 to vector<8x128xf32>
    %111 = arith.maximumf %109, %110 : vector<8x128xf32>
    %c24 = arith.constant 24 : index
    %112 = memref.load %arg1[%c24] : memref<64xf32, #tpu.memory_space<smem>>
    %113 = vector.broadcast %112 : f32 to vector<8x128xf32>
    %114 = arith.mulf %113, %15 : vector<8x128xf32>
    %c25 = arith.constant 25 : index
    %115 = memref.load %arg1[%c25] : memref<64xf32, #tpu.memory_space<smem>>
    %116 = vector.broadcast %115 : f32 to vector<8x128xf32>
    %117 = arith.mulf %116, %27 : vector<8x128xf32>
    %118 = arith.addf %114, %117 : vector<8x128xf32>
    %c26 = arith.constant 26 : index
    %119 = memref.load %arg1[%c26] : memref<64xf32, #tpu.memory_space<smem>>
    %120 = vector.broadcast %119 : f32 to vector<8x128xf32>
    %121 = arith.mulf %120, %39 : vector<8x128xf32>
    %122 = arith.addf %118, %121 : vector<8x128xf32>
    %c27 = arith.constant 27 : index
    %123 = memref.load %arg1[%c27] : memref<64xf32, #tpu.memory_space<smem>>
    %124 = vector.broadcast %123 : f32 to vector<8x128xf32>
    %125 = arith.mulf %124, %51 : vector<8x128xf32>
    %126 = arith.addf %122, %125 : vector<8x128xf32>
    %c31 = arith.constant 31 : index
    %127 = memref.load %arg1[%c31] : memref<64xf32, #tpu.memory_space<smem>>
    %128 = vector.broadcast %127 : f32 to vector<8x128xf32>
    %129 = arith.addf %126, %128 : vector<8x128xf32>
    %cst_12 = arith.constant 0.000000e+00 : f32
    %130 = vector.broadcast %cst_12 : f32 to vector<8x128xf32>
    %131 = arith.maximumf %129, %130 : vector<8x128xf32>
    %c32 = arith.constant 32 : index
    %132 = memref.load %arg1[%c32] : memref<64xf32, #tpu.memory_space<smem>>
    %133 = vector.broadcast %132 : f32 to vector<8x128xf32>
    %134 = arith.mulf %133, %71 : vector<8x128xf32>
    %c33 = arith.constant 33 : index
    %135 = memref.load %arg1[%c33] : memref<64xf32, #tpu.memory_space<smem>>
    %136 = vector.broadcast %135 : f32 to vector<8x128xf32>
    %137 = arith.mulf %136, %91 : vector<8x128xf32>
    %138 = arith.addf %134, %137 : vector<8x128xf32>
    %c34 = arith.constant 34 : index
    %139 = memref.load %arg1[%c34] : memref<64xf32, #tpu.memory_space<smem>>
    %140 = vector.broadcast %139 : f32 to vector<8x128xf32>
    %141 = arith.mulf %140, %111 : vector<8x128xf32>
    %142 = arith.addf %138, %141 : vector<8x128xf32>
    %c35 = arith.constant 35 : index
    %143 = memref.load %arg1[%c35] : memref<64xf32, #tpu.memory_space<smem>>
    %144 = vector.broadcast %143 : f32 to vector<8x128xf32>
    %145 = arith.mulf %144, %131 : vector<8x128xf32>
    %146 = arith.addf %142, %145 : vector<8x128xf32>
    %c36 = arith.constant 36 : index
    %147 = memref.load %arg1[%c36] : memref<64xf32, #tpu.memory_space<smem>>
    %148 = vector.broadcast %147 : f32 to vector<8x128xf32>
    %149 = arith.addf %146, %148 : vector<8x128xf32>
    %cst_13 = arith.constant 5.000000e-01 : f32
    %150 = vector.broadcast %cst_13 : f32 to vector<8x128xf32>
    %151 = arith.mulf %150, %149 : vector<8x128xf32>
    %152 = math.tanh %151 : vector<8x128xf32>
    %cst_14 = arith.constant 5.000000e-01 : f32
    %153 = vector.broadcast %cst_14 : f32 to vector<8x128xf32>
    %154 = arith.mulf %153, %152 : vector<8x128xf32>
    %cst_15 = arith.constant 5.000000e-01 : f32
    %155 = vector.broadcast %cst_15 : f32 to vector<8x128xf32>
    %156 = arith.addf %155, %154 : vector<8x128xf32>
    %c0_16 = arith.constant 0 : index
    %c0_17 = arith.constant 0 : index
    %157 = vector.load %arg3[%c0_16, %c0_17] : memref<8x128xf32, #tpu.memory_space<vmem>>, vector<8x128xf32>
    tpu.vector_store %arg3[%c0_16, %c0_17], %156 {strides = array<i32>} : memref<8x128xf32, #tpu.memory_space<vmem>>, vector<8x128xf32>,
    return
  }
  func.func @transform_0(%arg0: i32) -> i32 {
    %c0_i32 = arith.constant 0 : i32
    %c0_i32_0 = arith.constant 0 : i32
    return %c0_i32 : i32
  }
  func.func @transform_1(%arg0: i32) -> (i32, i32, i32) {
    %c0_i32 = arith.constant 0 : i32
    %c0_i32_0 = arith.constant 0 : i32
    %c0_i32_1 = arith.constant 0 : i32
    return %c0_i32, %arg0, %c0_i32_0 : i32, i32, i32
  }
  func.func @transform_2(%arg0: i32) -> (i32, i32) {
    %c0_i32 = arith.constant 0 : i32
    %c0_i32_0 = arith.constant 0 : i32
    return %arg0, %c0_i32 : i32, i32
  }
}

</mosaic_0001>

<bundles_post_ra>
// kernel: tpu_custom_call.1
= control target key start
LH: loop header
LB: loop body
LE: loop exit
PB: predicated region body
PF: predicated region fallthrough
CT: control target
= control target key end

     0   :  { %7 = vsyncpa [#allocation5], 0  ;;  %s376_s0 = inlined_call_operand.hbm [shape: f32[64], index: 0, kind: input, shape index: {}]   ;;  %s377_s1 = inlined_call_operand.hbm [shape: f32[2,8,128], index: 1, kind: input, shape index: {}]   ;;  %s378_s2 = inlined_call_operand.hbm [shape: f32[8,128], index: 2, kind: output, shape index: {}]  }
   0x1   :  { %8 = vsyncpa [#allocation3], 0 }
   0x2   :  { %9 = vsyncpa [#allocation4], 0  ;;  %s15_s11 = sshll.u32 %s376_s0, 4  ;;  %s23_s14 = sshll.u32 %s377_s1, 4  ;;  %s16_s11 = int_to_ptr.hbm [resolvable:$true] %s15_s11  ;;  %s24_s14 = int_to_ptr.hbm [resolvable:$true] %s23_s14 }
   0x3   :  { %s314_s15 = smov [#allocation2]   ;;  %s315_s16 = smov [#allocation6]  }
   0x4   :  { %18 = dma.hbm_to_smem %s16_s11, 16, %s314_s15, [#allocation5]  }
   0x5   :  { %s25_s17 = sshll.u32 %s315_s16, 4  ;;  %s316_s18 = smov 128   ;;  %s26_s17 = int_to_ptr.vmem [resolvable:$true] %s25_s17 }
   0x6   :  { %s317_s19 = smov 8  }
   0x7   :  { %31 = dma.hbm_to_vmem [thread:$0]  %s24_s14, 256, %s26_s17, [#allocation3], %s316_s18, %s316_s18, %s317_s19  }
   0x8   :  { %308 = dma.done.wait [#allocation5], 16  }
   0x9   :  { %309 = vsyncadd [#allocation5], 4294967280 }
   0xa   :  { %310 = dma.done.wait [#allocation3], 256  }
   0xb   :  { %311 = vsyncadd [#allocation3], 4294967040 }
   0xc   :  { %40 = sfence }
   0xd   :  { %s44_s0 = sld [smem:[#allocation2]]  ;;  %v41_v0 = vld [vmem:[#allocation6] sm:$0xff]  ;;  %v43_v1 = vld [vmem:[#allocation6 + $0x8] sm:$0xff] }
   0xe   :  { %s205_s20 = sld [smem:[#allocation2 + $0x1]] }
   0xf   :  { %s206_s21 = sld [smem:[#allocation2 + $0x8]] }
  0x10   :  { %s207_s22 = sld [smem:[#allocation2 + $0x2]] }
  0x11   :  { %s208_s1 = sld [smem:[#allocation2 + $0x3]] }
  0x12   :  { %s209_s23 = sld [smem:[#allocation2 + $0x9]] }
  0x13   :  { %v45_v2 = vstv %s44_s0  ;;  %s210_s24 = sld [smem:[#allocation2 + $0x4]] }
  0x14   :  { %v46_v3 = vmul.f32 %v45_v2, %v41_v0  ;;  %v48_v4 = vstv %s205_s20  ;;  %s211_s25 = sld [smem:[#allocation2 + $0x5]] }
  0x15   :  { %v49_v5 = vmul.f32 %v48_v4, %v43_v1  ;;  %s340_s26 = sld [smem:[#allocation2 + $0xa]]  ;;  %v52_v6 = vstv %s206_s21 }
  0x16   :  { %v56_v7 = vstv %s207_s22  ;;  %s213_s27 = sld [smem:[#allocation2 + $0x6]] }
  0x17   :  { %v50_v8 = vadd.f32 %v49_v5, %v46_v3  ;;  %v57_v9 = vmul.f32 %v56_v7, %v41_v0  ;;  %v59_v10 = vstv %s208_s1  ;;  %s214_s28 = sld [smem:[#allocation2 + $0x7]] }
  0x18   :  { %v60_v11 = vmul.f32 %v59_v10, %v43_v1  ;;  %s342_s29 = sld [smem:[#allocation2 + $0xb]]  ;;  %v63_v13 = vstv %s209_s23 }
  0x19   :  { %v53_v12 = vadd.f32 %v52_v6, %v50_v8  ;;  %v67_v14 = vstv %s210_s24  ;;  %s216_s30 = sld [smem:[#allocation2 + $0xc]] }
  0x1a   :  { %v61_v15 = vadd.f32 %v60_v11, %v57_v9  ;;  %v68_v16 = vmul.f32 %v67_v14, %v41_v0  ;;  %v70_v17 = vstv %s211_s25  ;;  %s217_s3 = sld [smem:[#allocation2 + $0xd]]  ;;  %s318_s25 = smov [#allocation7]  }
  0x1b   :  { %v71_v18 = vmul.f32 %v70_v17, %v43_v1  ;;  %s218_s4 = sld [smem:[#allocation2 + $0xe]]  ;;  %v344_v19 = vmax.f32 %v53_v12, 0.0  ;;  %v74_v21 = vstv %s340_s26  ;;  %s192_s26 = sshll.u32 %s318_s25, 4  ;;  %s193_s26 = int_to_ptr.vmem [resolvable:$true] %s192_s26 }
  0x1c   :  { %v64_v20 = vadd.f32 %v63_v13, %v61_v15  ;;  %v78_v22 = vstv %s213_s27  ;;  %s347_s5 = sld [smem:[#allocation2 + $0xf]] }
  0x1d   :  { %v72_v23 = vadd.f32 %v71_v18, %v68_v16  ;;  %v79_v24 = vmul.f32 %v78_v22, %v41_v0  ;;  %v81_v25 = vstv %s214_s28  ;;  %s349_s6 = sld [smem:[#allocation2 + $0x1c]] }
  0x1e   :  { %v351_v26 = vmax.f32 %v64_v20, 0.0  ;;  %v82_v27 = vmul.f32 %v81_v25, %v43_v1  ;;  %s221_s7 = sld [smem:[#allocation2 + $0x10]]  ;;  %v85_v29 = vstv %s342_s29  ;;  %s194_s29 = sshll.u32 %s378_s2, 4  ;;  %s195_s29 = int_to_ptr.hbm [resolvable:$true] %s194_s29 }
  0x1f   :  { %v75_v28 = vadd.f32 %v74_v21, %v72_v23  ;;  %v89_v30 = vstv %s216_s30  ;;  %s222_s8 = sld [smem:[#allocation2 + $0x11]] }
  0x20   :  { %v83_v31 = vadd.f32 %v82_v27, %v79_v24  ;;  %v90_v32 = vmul.f32 %v89_v30, %v344_v19  ;;  %v92_v33 = vstv %s217_s3  ;;  %s223_s9 = sld [smem:[#allocation2 + $0x12]] }
  0x21   :  { %v76_v34 = vmax.f32 %v75_v28, 0.0  ;;  %v93_v35 = vmul.f32 %v92_v33, %v351_v26  ;;  %v96_v36 = vstv %s218_s4  ;;  %s224_s10 = sld [smem:[#allocation2 + $0x13]] }
  0x22   :  { %v86_v37 = vadd.f32 %v85_v29, %v83_v31  ;;  %s356_s11 = sld [smem:[#allocation2 + $0x1d]]  ;;  %v100_v40 = vstv %s347_s5 }
  0x23   :  { %v94_v38 = vadd.f32 %v93_v35, %v90_v32  ;;  %v97_v39 = vmul.f32 %v96_v36, %v76_v34  ;;  %s226_s12 = sld [smem:[#allocation2 + $0x14]]  ;;  %v104_v54 = vstv %s349_s6 }
  0x24   :  { %v87_v41 = vmax.f32 %v86_v37, 0.0  ;;  %v108_v42 = vstv %s221_s7  ;;  %s227_s13 = sld [smem:[#allocation2 + $0x15]] }
  0x25   :  { %v98_v43 = vadd.f32 %v97_v39, %v94_v38  ;;  %v109_v44 = vmul.f32 %v108_v42, %v344_v19  ;;  %v111_v45 = vstv %s222_s8  ;;  %s228_s14 = sld [smem:[#allocation2 + $0x16]] }
  0x26   :  { %v101_v46 = vmul.f32 %v100_v40, %v87_v41  ;;  %v112_v47 = vmul.f32 %v111_v45, %v351_v26  ;;  %v115_v48 = vstv %s223_s9  ;;  %s229_s15 = sld [smem:[#allocation2 + $0x17]] }
  0x27   :  { %v116_v49 = vmul.f32 %v115_v48, %v76_v34  ;;  %v119_v50 = vstv %s224_s10  ;;  %s361_s16 = sld [smem:[#allocation2 + $0x1e]] }
  0x28   :  { %v102_v51 = vadd.f32 %v101_v46, %v98_v43  ;;  %v113_v52 = vadd.f32 %v112_v47, %v109_v44  ;;  %v120_v53 = vmul.f32 %v119_v50, %v87_v41  ;;  %s231_s17 = sld [smem:[#allocation2 + $0x18]]  ;;  %v123_v59 = vstv %s356_s11 }
  0x29   :  { %v127_v55 = vstv %s226_s12  ;;  %s232_s18 = sld [smem:[#allocation2 + $0x19]] }
  0x2a   :  { %v117_v56 = vadd.f32 %v116_v49, %v113_v52  ;;  %v128_v57 = vmul.f32 %v127_v55, %v344_v19  ;;  %v130_v58 = vstv %s227_s13  ;;  %s233_s19 = sld [smem:[#allocation2 + $0x1a]]  ;;  %v105_v62 = vadd.f32 %v104_v54, %v102_v51 }
  0x2b   :  { %v131_v60 = vmul.f32 %v130_v58, %v351_v26  ;;  %v134_v61 = vstv %s228_s14  ;;  %s234_s0 = sld [smem:[#allocation2 + $0x1b]] }
  0x2c   :  { %v121_v63 = vadd.f32 %v120_v53, %v117_v56  ;;  %v135_v0 = vmul.f32 %v134_v61, %v76_v34  ;;  %v138_v1 = vstv %s229_s15  ;;  %s367_s20 = sld [smem:[#allocation2 + $0x1f]]  ;;  %v106_v9 = vmax.f32 %v105_v62, 0.0 }
  0x2d   :  { %v132_v2 = vadd.f32 %v131_v60, %v128_v57  ;;  %v139_v3 = vmul.f32 %v138_v1, %v87_v41  ;;  %s236_s21 = sld [smem:[#allocation2 + $0x20]]  ;;  %v142_v10 = vstv %s361_s16 }
  0x2e   :  { %v124_v4 = vadd.f32 %v123_v59, %v121_v63  ;;  %v146_v5 = vstv %s231_s17  ;;  %s237_s22 = sld [smem:[#allocation2 + $0x21]] }
  0x2f   :  { %v136_v6 = vadd.f32 %v135_v0, %v132_v2  ;;  %v147_v7 = vmul.f32 %v146_v5, %v344_v19  ;;  %v149_v8 = vstv %s232_s18  ;;  %s238_s1 = sld [smem:[#allocation2 + $0x22]] }
  0x30   :  { %v150_v11 = vmul.f32 %v149_v8, %v351_v26  ;;  %v153_v12 = vstv %s233_s19  ;;  %v125_v13 = vmax.f32 %v124_v4, 0.0  ;;  %s239_s23 = sld [smem:[#allocation2 + $0x23]] }
  0x31   :  { %v140_v14 = vadd.f32 %v139_v3, %v136_v6  ;;  %v154_v15 = vmul.f32 %v153_v12, %v76_v34  ;;  %v157_v16 = vstv %s234_s0  ;;  %s240_s24 = sld [smem:[#allocation2 + $0x24]] }
  0x32   :  { %v151_v17 = vadd.f32 %v150_v11, %v147_v7  ;;  %v158_v18 = vmul.f32 %v157_v16, %v87_v41  ;;  %v161_v25 = vstv %s367_s20 }
  0x33   :  { %v143_v20 = vadd.f32 %v142_v10, %v140_v14  ;;  %v165_v21 = vstv %s236_s21 }
  0x34   :  { %v155_v22 = vadd.f32 %v154_v15, %v151_v17  ;;  %v166_v23 = vmul.f32 %v165_v21, %v106_v9  ;;  %v168_v19 = vstv %s237_s22 }
  0x35   :  { %v144_v24 = vmax.f32 %v143_v20, 0.0  ;;  %v169_v27 = vmul.f32 %v168_v19, %v125_v13  ;;  %v172_v28 = vstv %s238_s1 }
  0x36   :  { %v159_v29 = vadd.f32 %v158_v18, %v155_v22  ;;  %v176_v32 = vstv %s239_s23 }
  0x37   :  { %v170_v26 = vadd.f32 %v169_v27, %v166_v23  ;;  %v173_v30 = vmul.f32 %v172_v28, %v144_v24  ;;  %v180_v36 = vstv %s240_s24 }
  0x38   :  { %v162_v31 = vadd.f32 %v161_v25, %v159_v29 }
  0x39   :  { %v174_v34 = vadd.f32 %v173_v30, %v170_v26 }
  0x3a   :  { %v163_v33 = vmax.f32 %v162_v31, 0.0 }
  0x3c   :  { %v177_v35 = vmul.f32 %v176_v32, %v163_v33 }
  0x3e   :  { %v178_v37 = vadd.f32 %v177_v35, %v174_v34 }
  0x40   :  { %v181_v38 = vadd.f32 %v180_v36, %v178_v37 }
  0x42   :  { %v182_v39 = vmul.f32 0.5, %v181_v38 }
  0x44   :  { %246 = vtanh.f32 %v182_v39 }
  0x4a   :  { %v247_v40 = vpop.eup %246 }
  0x4b   :  { %v184_v41 = vmul.f32 0.5, %v247_v40 }
  0x4d   :  { %v185_v42 = vadd.f32 0.5, %v184_v41 }
  0x4f   :  { %186 = vst [vmem:[#allocation7] sm:$0xff] %v185_v42 }
  0x50   :  { %197 = dma.vmem_to_hbm [thread:$0]  %s193_s26, 128, %s195_s29, [#allocation4]  }
  0x51   :  { %312 = dma.done.wait [#allocation4], 128  }
  0x52   :  { %313 = vsyncadd [#allocation4], 4294967168 }
  0x53   :  { %202 = vsyncpa [#allocation3], 1 }
  0x54   :  { %203 = vsyncpa [#allocation4], 1 }
  0x55   :  { %204 = vsyncpa [#allocation5], 1 }

</bundles_post_ra>
